<compile_context>
chip_gen: v6e
topology: v6e:2x2x1
jax: 0.10.0
libtpu: 0.0.40
codegen_flags: <defaults>
</compile_context>

<pallas_src>
import functools

import jax
import jax.numpy as jnp
from jax.experimental import pallas as pl
from jax.experimental.pallas import tpu as pltpu

LEAKY_SLOPE = 0.01                 # torch.nn.LeakyReLU default
IN_EPS = 1e-5                      # torch.nn.InstanceNorm3d default
VMEM_LIMIT = 48 * 1024 * 1024      # > v5e/v6e scoped defaults, < v7x 64 MiB physical


# ---------------------------------------------------------------------------
# Kernel 1: ConvTranspose3d with kernel=2, stride=2, padding=0.
# stride == kernel => every output voxel comes from exactly one input voxel and
# one tap.  Grid = (N,); one grid step per sample loops the 4 (kd,kh) taps,
# each tap is ONE matmul
#     (d*h*w, Cin) @ (Cin, 2*Cout)          # both kw taps fused into the result
# stored into the interleaved (1, d, 2, h, 2, w, 2*Cout) output block, so the
# wrapper-side "de-tap" is a pure row-major reshape (no HBM transpose pass).
# ---------------------------------------------------------------------------
def _upsample_kernel(x_ref, w_ref, b_ref, o_ref):
    # x_ref: (1, d, h, w, Cx) bf16 ; w_ref: (4, Cx, 2*Cx) bf16 ; b_ref: (1, 2*Cx) f32
    # o_ref: (1, d, 2, h, 2, w, 2*Cx) bf16
    _, d, h, w, cx = x_ref.shape
    xf = x_ref[0].reshape(d * h * w, cx)
    for kd in range(2):
        for kh in range(2):
            y = jnp.dot(xf, w_ref[2 * kd + kh],
                        preferred_element_type=jnp.float32) + b_ref[...]
            o_ref[:, :, kd:kd + 1, :, kh:kh + 1, :, :] = (
                y.astype(o_ref.dtype).reshape(1, d, 1, h, 1, w, 2 * cx))


def conv_transpose_up(x, w, b):
    # x: (N, d, h, w, Cx) -> (N, 2d, 2h, 2w, Cx) bf16
    N, d, h, wn, cx = x.shape
    # (kd,kh,kw,ci,co) -> (kd*2+kh, ci, kw*Cx+co): one weight slab per (kd,kh)
    w4 = jnp.transpose(w, (0, 1, 3, 2, 4)).reshape(4, cx, 2 * cx).astype(jnp.bfloat16)
    b2 = jnp.concatenate([b, b]).reshape(1, 2 * cx).astype(jnp.float32)

    out = pl.pallas_call(
        _upsample_kernel,
        grid=(N,),
        in_specs=[
            pl.BlockSpec((1, d, h, wn, cx), lambda n: (n, 0, 0, 0, 0)),
            pl.BlockSpec((4, cx, 2 * cx), lambda n: (0, 0, 0)),
            pl.BlockSpec((1, 2 * cx), lambda n: (0, 0)),
        ],
        out_specs=pl.BlockSpec((1, d, 2, h, 2, wn, 2 * cx),
                               lambda n: (n, 0, 0, 0, 0, 0, 0)),
        out_shape=jax.ShapeDtypeStruct((N, d, 2, h, 2, wn, 2 * cx), jnp.bfloat16),
        compiler_params=pltpu.CompilerParams(
            dimension_semantics=("parallel",),
            vmem_limit_bytes=VMEM_LIMIT),
    )(x.astype(jnp.bfloat16), w4, b2)
    # Free (row-major) reshape: (N,d,2,h,2,w,2Cx) is exactly the interleaved
    # (N,2d,2h,2w,Cx) tensor — no data movement.
    return out.reshape(N, 2 * d, 2 * h, 2 * wn, cx)


# ---------------------------------------------------------------------------
# Kernel 2: fused [optional channel-concat] + Conv3d(3x3x3, pad=1) + bias
#           + LeakyReLU + InstanceNorm3d (affine) + [optional residual add].
# One grid step = one full sample, so per-(sample, channel) InstanceNorm stats
# are computed entirely in-kernel (two-pass: mean, then centered variance).
# Per input slab a W-im2col scratch (D+2, H+2, W, 3*Cin) bf16 is built from 3
# shifted copies (W-pad folded in, only D/H halo faces zeroed); every (kd,kh)
# tap is then a plain slice -> (DHW, 3*Cin) @ (3*Cin, Cout) matmul accumulated
# into a persistent f32 VMEM accumulator.  The "concat" is realised by giving
# each input slab its own weight slab accumulated into the same accumulator.
# ---------------------------------------------------------------------------
def _conv_block_kernel(*refs, nslab, add_residual):
    xs = refs[:nslab]
    ws = refs[nslab:2 * nslab]
    b_ref, g_ref, beta_ref = refs[2 * nslab:2 * nslab + 3]
    idx = 2 * nslab + 3
    res_ref = refs[idx] if add_residual else None
    idx += 1 if add_residual else 0
    o_ref = refs[idx]
    acc_ref = refs[idx + 1]
    im2s = refs[idx + 2: idx + 2 + nslab]

    _, D, H, W, co = o_ref.shape
    DHW = D * H * W
    acc_ref[...] = jnp.zeros_like(acc_ref)

    for x_ref, w_ref, im2_ref in zip(xs, ws, im2s):
        cin = x_ref.shape[-1]
        c3 = 3 * cin
        x = x_ref[0].astype(jnp.bfloat16)                       # (D, H, W, cin)
        zcol = jnp.zeros((D, H, 1, cin), jnp.bfloat16)

        # Zero only the 4 D/H halo faces (no full-volume zero fill); done every
        # step since VMEM scratch is per-core and the grid axis is "parallel".
        im2_ref[0:1, :, :, :] = jnp.zeros((1, H + 2, W, c3), im2_ref.dtype)
        im2_ref[D + 1:D + 2, :, :, :] = jnp.zeros((1, H + 2, W, c3), im2_ref.dtype)
        im2_ref[1:D + 1, 0:1, :, :] = jnp.zeros((D, 1, W, c3), im2_ref.dtype)
        im2_ref[1:D + 1, H + 1:H + 2, :, :] = jnp.zeros((D, 1, W, c3), im2_ref.dtype)

        # W-im2col: 3 shifted copies, kw taps folded onto the lane axis.
        # Interior stores stay W-aligned; the W-pad zeros ride in the values.
        im2_ref[1:D + 1, 1:H + 1, :, 0:cin] = jnp.concatenate(
            [zcol, x[:, :, :W - 1, :]], axis=2)                  # kw = 0  (w-1)
        im2_ref[1:D + 1, 1:H + 1, :, cin:2 * cin] = x            # kw = 1  (w)
        im2_ref[1:D + 1, 1:H + 1, :, 2 * cin:c3] = jnp.concatenate(
            [x[:, :, 1:, :], zcol], axis=2)                      # kw = 2  (w+1)

        # 9 (kd,kh) taps with contraction depth K = 3*cin.  Accumulating into
        # the VMEM scratch bounds vreg live ranges (each patch dies at the +=);
        # trip count is a small static 9, so the unroll is intentional.
        for kd in range(3):
            for kh in range(3):
                patch = im2_ref[kd:kd + D, kh:kh + H, :, :].reshape(DHW, c3)
                acc_ref[...] += jnp.dot(patch, w_ref[kd, kh],
                                        preferred_element_type=jnp.float32)

    y = acc_ref[...] + b_ref[...]
    y = jnp.where(y >= 0, y, LEAKY_SLOPE * y)                    # LeakyReLU

    # InstanceNorm3d (affine): two-pass per-channel stats over spatial dims
    # (mean, then centered variance) — no E[x^2]-E[x]^2 cancellation.
    inv_n = 1.0 / DHW
    mean = jnp.sum(y, axis=0, keepdims=True) * inv_n
    yc = y - mean
    var = jnp.sum(yc * yc, axis=0, keepdims=True) * inv_n
    y = yc * jax.lax.rsqrt(var + IN_EPS) * g_ref[...] + beta_ref[...]

    if add_residual:
        y = y + res_ref[0].reshape(DHW, co).astype(jnp.float32)

    o_ref[...] = y.reshape(1, D, H, W, co).astype(o_ref.dtype)


def conv_block(xs, ws, b, gamma, beta, residual=None, out_dtype=jnp.float32):
    # xs: list of (N, D, H, W, Cin_k) input slabs (channel-concat is implicit);
    # ws: matching list of (3, 3, 3, Cin_k, Cout) weights.
    N, D, H, W, _ = xs[0].shape
    co = ws[0].shape[-1]
    nslab = len(xs)

    in_specs, args = [], []
    for x in xs:
        c = x.shape[-1]
        in_specs.append(pl.BlockSpec((1, D, H, W, c), lambda n: (n, 0, 0, 0, 0)))
        args.append(x.astype(jnp.bfloat16))       # bf16 activation stream
    for w in ws:
        cin = w.shape[3]
        # (kd,kh,kw,ci,co) -> (kd,kh, kw*Cin+ci, co): matches the W-im2col order.
        in_specs.append(pl.BlockSpec((3, 3, 3 * cin, co), lambda n: (0, 0, 0, 0)))
        args.append(w.reshape(3, 3, 3 * cin, co).astype(jnp.bfloat16))
    for v in (b, gamma, beta):
        in_specs.append(pl.BlockSpec((1, co), lambda n: (0, 0)))
        args.append(v.reshape(1, co).astype(jnp.float32))
    if residual is not None:
        in_specs.append(pl.BlockSpec((1, D, H, W, co), lambda n: (n, 0, 0, 0, 0)))
        args.append(residual)

    kernel = functools.partial(_conv_block_kernel, nslab=nslab,
                               add_residual=residual is not None)
    scratch = [pltpu.VMEM((D * H * W, co), jnp.float32)]             # f32 accumulator
    scratch += [pltpu.VMEM((D + 2, H + 2, W, 3 * x.shape[-1]), jnp.bfloat16)
                for x in xs]                                         # W-im2col buffers
    return pl.pallas_call(
        kernel,
        grid=(N,),
        in_specs=in_specs,
        out_specs=pl.BlockSpec((1, D, H, W, co), lambda n: (n, 0, 0, 0, 0)),
        out_shape=jax.ShapeDtypeStruct((N, D, H, W, co), out_dtype),
        scratch_shapes=scratch,
        compiler_params=pltpu.CompilerParams(
            dimension_semantics=("parallel",),
            vmem_limit_bytes=VMEM_LIMIT),
    )(*args)


# ---------------------------------------------------------------------------
# UNet_up_block forward
# ---------------------------------------------------------------------------
def unet_up_block_forward(params, prev_feature_map, x):
    # prev_feature_map: (N, D, H, W, prev_C) f32; x: (N, D/2, H/2, W/2, in_C) f32
    cx = x.shape[-1]
    xt = conv_transpose_up(x, params["trans_w"], params["trans_b"])  # bf16, 2x res

    # cat((x, prev), channel) fused into conv1 by splitting the weight into slabs.
    w1 = params["conv1_w"]
    w1x, w1p = w1[:, :, :, :cx, :], w1[:, :, :, cx:, :]

    g, bt = params["bn1_gamma"], params["bn1_beta"]  # bn1 reused 3x, as in source
    # TODO(synk): Dropout3d / DropBlock3D are stochastic training-time ops; the
    # deterministic (eval-mode) forward treats them as identity.
    h1 = conv_block([xt, prev_feature_map], [w1x, w1p],
                    params["conv1_b"], g, bt, out_dtype=jnp.bfloat16)
    h2 = conv_block([h1], [params["conv2_w"]], params["conv2_b"], g, bt,
                    out_dtype=jnp.bfloat16)
    h3 = conv_block([h2], [params["conv3_w"]], params["conv3_b"], g, bt,
                    residual=h1, out_dtype=jnp.float32)
    return h3


def init_params(key, prev_channel, input_channel, output_channel):
    ks = jax.random.split(key, 8)
    s = 0.1
    cat_c = prev_channel + input_channel
    return {
        # ConvTranspose3d(in_C, in_C, 2, 2): weight laid out (kD,kH,kW,Cin,Cout)
        "trans_w": s * jax.random.normal(ks[0], (2, 2, 2, input_channel, input_channel), jnp.float32),
        "trans_b": s * jax.random.normal(ks[1], (input_channel,), jnp.float32),
        "conv1_w": s * jax.random.normal(ks[2], (3, 3, 3, cat_c, output_channel), jnp.float32),
        "conv1_b": s * jax.random.normal(ks[3], (output_channel,), jnp.float32),
        "conv2_w": s * jax.random.normal(ks[4], (3, 3, 3, output_channel, output_channel), jnp.float32),
        "conv2_b": s * jax.random.normal(ks[5], (output_channel,), jnp.float32),
        "conv3_w": s * jax.random.normal(ks[6], (3, 3, 3, output_channel, output_channel), jnp.float32),
        "conv3_b": s * jax.random.normal(ks[7], (output_channel,), jnp.float32),
        # InstanceNorm3d(output_channel, affine=True): init like PyTorch (1, 0)
        "bn1_gamma": jnp.ones((output_channel,), jnp.float32),
        "bn1_beta": jnp.zeros((output_channel,), jnp.float32),
    }


if __name__ == "__main__":
    prev_channel, input_channel, output_channel = 4, 4, 8
    N, d = 2, 4            # low-res spatial 4^3 -> upsampled 8^3

    key = jax.random.PRNGKey(0)
    kp, kx, kprev = jax.random.split(key, 3)
    params = init_params(kp, prev_channel, input_channel, output_channel)

    x = jax.random.normal(kx, (N, d, d, d, input_channel), jnp.float32)
    prev = jax.random.normal(kprev, (N, 2 * d, 2 * d, 2 * d, prev_channel), jnp.float32)

    out = unet_up_block_forward(params, prev, x)
    out = jax.block_until_ready(out)
    assert out.shape == (N, 2 * d, 2 * d, 2 * d, output_channel)
    assert bool(jnp.all(jnp.isfinite(out)))
    print("KERNEL_OK")
</pallas_src>

<mosaic_0001>
module attributes {stable_mosaic.version = 11 : i64} {
  func.func @_upsample_kernel(%arg0: i32, %arg1: memref<1x4x4x4x4xbf16, #tpu.memory_space<vmem>>, %arg2: memref<4x4x8xbf16, #tpu.memory_space<vmem>>, %arg3: memref<1x8xf32, #tpu.memory_space<vmem>>, %arg4: memref<1x4x2x4x2x4x8xbf16, #tpu.memory_space<vmem>>) attributes {dimension_semantics = [#tpu.dimension_semantics<parallel>], iteration_bounds = array<i64: 2>, scalar_prefetch = 0 : i64, scratch_operands = 0 : i64, tpu.core_type = #tpu.core_type<tc>, window_params = [{transform_indices = @transform_0, window_bounds = array<i64: 1, 4, 4, 4, 4>}, {pipeline_mode = #tpu.pipeline_mode<synchronous>, transform_indices = @transform_1, window_bounds = array<i64: 4, 4, 8>}, {pipeline_mode = #tpu.pipeline_mode<synchronous>, transform_indices = @transform_2, window_bounds = array<i64: 1, 8>}, {transform_indices = @transform_3, window_bounds = array<i64: 1, 4, 2, 4, 2, 4, 8>}]} {
    %c0 = arith.constant 0 : index
    %c0_0 = arith.constant 0 : index
    %c0_1 = arith.constant 0 : index
    %c0_2 = arith.constant 0 : index
    %c0_3 = arith.constant 0 : index
    %0 = vector.load %arg1[%c0, %c0_0, %c0_1, %c0_2, %c0_3] : memref<1x4x4x4x4xbf16, #tpu.memory_space<vmem>>, vector<1x4x4x4x4xbf16>
    %1 = vector.shape_cast %0 : vector<1x4x4x4x4xbf16> to vector<4x4x4x4xbf16>
    %2 = vector.shape_cast %1 : vector<4x4x4x4xbf16> to vector<64x4xbf16>
    %c0_4 = arith.constant 0 : index
    %c0_5 = arith.constant 0 : index
    %c0_6 = arith.constant 0 : index
    %3 = vector.load %arg2[%c0_4, %c0_5, %c0_6] : memref<4x4x8xbf16, #tpu.memory_space<vmem>>, vector<1x4x8xbf16>
    %4 = vector.shape_cast %3 : vector<1x4x8xbf16> to vector<4x8xbf16>
    %cst = arith.constant dense<0.000000e+00> : vector<64x8xf32>
    %5 = tpu.matmul %2, %4, %cst {dimension_numbers = #tpu.dot_dimension_numbers<[1], [0], [0], [1], [0, 0, 1, 1], [], []>} : vector<64x4xbf16>, vector<4x8xbf16>, vector<64x8xf32> -> vector<64x8xf32>
    %c0_7 = arith.constant 0 : index
    %c0_8 = arith.constant 0 : index
    %6 = vector.load %arg3[%c0_7, %c0_8] : memref<1x8xf32, #tpu.memory_space<vmem>>, vector<1x8xf32>
    %7 = vector.broadcast %6 : vector<1x8xf32> to vector<64x8xf32>
    %8 = arith.addf %5, %7 : vector<64x8xf32>
    %9 = arith.truncf %8 : vector<64x8xf32> to vector<64x8xbf16>
    %10 = vector.shape_cast %9 : vector<64x8xbf16> to vector<1x4x1x4x1x4x8xbf16>
    %c0_9 = arith.constant 0 : index
    %c0_10 = arith.constant 0 : index
    %c0_11 = arith.constant 0 : index
    %c0_12 = arith.constant 0 : index
    %c0_13 = arith.constant 0 : index
    %c0_14 = arith.constant 0 : index
    %c0_15 = arith.constant 0 : index
    %11 = vector.load %arg4[%c0_9, %c0_10, %c0_11, %c0_12, %c0_13, %c0_14, %c0_15] : memref<1x4x2x4x2x4x8xbf16, #tpu.memory_space<vmem>>, vector<1x4x1x4x1x4x8xbf16>
    tpu.vector_store %arg4[%c0_9, %c0_10, %c0_11, %c0_12, %c0_13, %c0_14, %c0_15], %10 {strides = array<i32>} : memref<1x4x2x4x2x4x8xbf16, #tpu.memory_space<vmem>>, vector<1x4x1x4x1x4x8xbf16>,
    %c1 = arith.constant 1 : index
    %c0_16 = arith.constant 0 : index
    %c0_17 = arith.constant 0 : index
    %12 = vector.load %arg2[%c1, %c0_16, %c0_17] : memref<4x4x8xbf16, #tpu.memory_space<vmem>>, vector<1x4x8xbf16>
    %13 = vector.shape_cast %12 : vector<1x4x8xbf16> to vector<4x8xbf16>
    %cst_18 = arith.constant dense<0.000000e+00> : vector<64x8xf32>
    %14 = tpu.matmul %2, %13, %cst_18 {dimension_numbers = #tpu.dot_dimension_numbers<[1], [0], [0], [1], [0, 0, 1, 1], [], []>} : vector<64x4xbf16>, vector<4x8xbf16>, vector<64x8xf32> -> vector<64x8xf32>
    %c0_19 = arith.constant 0 : index
    %c0_20 = arith.constant 0 : index
    %15 = vector.load %arg3[%c0_19, %c0_20] : memref<1x8xf32, #tpu.memory_space<vmem>>, vector<1x8xf32>
    %16 = vector.broadcast %15 : vector<1x8xf32> to vector<64x8xf32>
    %17 = arith.addf %14, %16 : vector<64x8xf32>
    %18 = arith.truncf %17 : vector<64x8xf32> to vector<64x8xbf16>
    %19 = vector.shape_cast %18 : vector<64x8xbf16> to vector<1x4x1x4x1x4x8xbf16>
    %c0_21 = arith.constant 0 : index
    %c0_22 = arith.constant 0 : index
    %c0_23 = arith.constant 0 : index
    %c0_24 = arith.constant 0 : index
    %c1_25 = arith.constant 1 : index
    %c0_26 = arith.constant 0 : index
    %c0_27 = arith.constant 0 : index
    %20 = vector.load %arg4[%c0_21, %c0_22, %c0_23, %c0_24, %c1_25, %c0_26, %c0_27] : memref<1x4x2x4x2x4x8xbf16, #tpu.memory_space<vmem>>, vector<1x4x1x4x1x4x8xbf16>
    tpu.vector_store %arg4[%c0_21, %c0_22, %c0_23, %c0_24, %c1_25, %c0_26, %c0_27], %19 {strides = array<i32>} : memref<1x4x2x4x2x4x8xbf16, #tpu.memory_space<vmem>>, vector<1x4x1x4x1x4x8xbf16>,
    %c2 = arith.constant 2 : index
    %c0_28 = arith.constant 0 : index
    %c0_29 = arith.constant 0 : index
    %21 = vector.load %arg2[%c2, %c0_28, %c0_29] : memref<4x4x8xbf16, #tpu.memory_space<vmem>>, vector<1x4x8xbf16>
    %22 = vector.shape_cast %21 : vector<1x4x8xbf16> to vector<4x8xbf16>
    %cst_30 = arith.constant dense<0.000000e+00> : vector<64x8xf32>
    %23 = tpu.matmul %2, %22, %cst_30 {dimension_numbers = #tpu.dot_dimension_numbers<[1], [0], [0], [1], [0, 0, 1, 1], [], []>} : vector<64x4xbf16>, vector<4x8xbf16>, vector<64x8xf32> -> vector<64x8xf32>
    %c0_31 = arith.constant 0 : index
    %c0_32 = arith.constant 0 : index
    %24 = vector.load %arg3[%c0_31, %c0_32] : memref<1x8xf32, #tpu.memory_space<vmem>>, vector<1x8xf32>
    %25 = vector.broadcast %24 : vector<1x8xf32> to vector<64x8xf32>
    %26 = arith.addf %23, %25 : vector<64x8xf32>
    %27 = arith.truncf %26 : vector<64x8xf32> to vector<64x8xbf16>
    %28 = vector.shape_cast %27 : vector<64x8xbf16> to vector<1x4x1x4x1x4x8xbf16>
    %c0_33 = arith.constant 0 : index
    %c0_34 = arith.constant 0 : index
    %c1_35 = arith.constant 1 : index
    %c0_36 = arith.constant 0 : index
    %c0_37 = arith.constant 0 : index
    %c0_38 = arith.constant 0 : index
    %c0_39 = arith.constant 0 : index
    %29 = vector.load %arg4[%c0_33, %c0_34, %c1_35, %c0_36, %c0_37, %c0_38, %c0_39] : memref<1x4x2x4x2x4x8xbf16, #tpu.memory_space<vmem>>, vector<1x4x1x4x1x4x8xbf16>
    tpu.vector_store %arg4[%c0_33, %c0_34, %c1_35, %c0_36, %c0_37, %c0_38, %c0_39], %28 {strides = array<i32>} : memref<1x4x2x4x2x4x8xbf16, #tpu.memory_space<vmem>>, vector<1x4x1x4x1x4x8xbf16>,
    %c3 = arith.constant 3 : index
    %c0_40 = arith.constant 0 : index
    %c0_41 = arith.constant 0 : index
    %30 = vector.load %arg2[%c3, %c0_40, %c0_41] : memref<4x4x8xbf16, #tpu.memory_space<vmem>>, vector<1x4x8xbf16>
    %31 = vector.shape_cast %30 : vector<1x4x8xbf16> to vector<4x8xbf16>
    %cst_42 = arith.constant dense<0.000000e+00> : vector<64x8xf32>
    %32 = tpu.matmul %2, %31, %cst_42 {dimension_numbers = #tpu.dot_dimension_numbers<[1], [0], [0], [1], [0, 0, 1, 1], [], []>} : vector<64x4xbf16>, vector<4x8xbf16>, vector<64x8xf32> -> vector<64x8xf32>
    %c0_43 = arith.constant 0 : index
    %c0_44 = arith.constant 0 : index
    %33 = vector.load %arg3[%c0_43, %c0_44] : memref<1x8xf32, #tpu.memory_space<vmem>>, vector<1x8xf32>
    %34 = vector.broadcast %33 : vector<1x8xf32> to vector<64x8xf32>
    %35 = arith.addf %32, %34 : vector<64x8xf32>
    %36 = arith.truncf %35 : vector<64x8xf32> to vector<64x8xbf16>
    %37 = vector.shape_cast %36 : vector<64x8xbf16> to vector<1x4x1x4x1x4x8xbf16>
    %c0_45 = arith.constant 0 : index
    %c0_46 = arith.constant 0 : index
    %c1_47 = arith.constant 1 : index
    %c0_48 = arith.constant 0 : index
    %c1_49 = arith.constant 1 : index
    %c0_50 = arith.constant 0 : index
    %c0_51 = arith.constant 0 : index
    %38 = vector.load %arg4[%c0_45, %c0_46, %c1_47, %c0_48, %c1_49, %c0_50, %c0_51] : memref<1x4x2x4x2x4x8xbf16, #tpu.memory_space<vmem>>, vector<1x4x1x4x1x4x8xbf16>
    tpu.vector_store %arg4[%c0_45, %c0_46, %c1_47, %c0_48, %c1_49, %c0_50, %c0_51], %37 {strides = array<i32>} : memref<1x4x2x4x2x4x8xbf16, #tpu.memory_space<vmem>>, vector<1x4x1x4x1x4x8xbf16>,
    return
  }
  func.func @transform_0(%arg0: i32) -> (i32, i32, i32, i32, i32) {
    %c0_i32 = arith.constant 0 : i32
    %c0_i32_0 = arith.constant 0 : i32
    %c0_i32_1 = arith.constant 0 : i32
    %c0_i32_2 = arith.constant 0 : i32
    %c0_i32_3 = arith.constant 0 : i32
    return %arg0, %c0_i32, %c0_i32_0, %c0_i32_1, %c0_i32_2 : i32, i32, i32, i32, i32
  }
  func.func @transform_1(%arg0: i32) -> (i32, i32, i32) {
    %c0_i32 = arith.constant 0 : i32
    %c0_i32_0 = arith.constant 0 : i32
    %c0_i32_1 = arith.constant 0 : i32
    %c0_i32_2 = arith.constant 0 : i32
    return %c0_i32, %c0_i32_0, %c0_i32_1 : i32, i32, i32
  }
  func.func @transform_2(%arg0: i32) -> (i32, i32) {
    %c0_i32 = arith.constant 0 : i32
    %c0_i32_0 = arith.constant 0 : i32
    %c0_i32_1 = arith.constant 0 : i32
    return %c0_i32, %c0_i32_0 : i32, i32
  }
  func.func @transform_3(%arg0: i32) -> (i32, i32, i32, i32, i32, i32, i32) {
    %c0_i32 = arith.constant 0 : i32
    %c0_i32_0 = arith.constant 0 : i32
    %c0_i32_1 = arith.constant 0 : i32
    %c0_i32_2 = arith.constant 0 : i32
    %c0_i32_3 = arith.constant 0 : i32
    %c0_i32_4 = arith.constant 0 : i32
    %c0_i32_5 = arith.constant 0 : i32
    return %arg0, %c0_i32, %c0_i32_0, %c0_i32_1, %c0_i32_2, %c0_i32_3, %c0_i32_4 : i32, i32, i32, i32, i32, i32, i32
  }
}

</mosaic_0001>

<bundles_post_ra>
// kernel: tpu_custom_call.1
= control target key start
LH: loop header
LB: loop body
LE: loop exit
PB: predicated region body
PF: predicated region fallthrough
CT: control target
= control target key end

     0   :  { %8 = vsyncpa [#allocation3], 0  ;;  %s1975_s0 = inlined_call_operand.hbm [shape: bf16[2,4,4,4,4], index: 0, kind: input, shape index: {}]   ;;  %s1976_s1 = inlined_call_operand.hbm [shape: bf16[4,4,8], index: 1, kind: input, shape index: {}]   ;;  %s1977_s2 = inlined_call_operand.vmem [shape: f32[1,8], index: 2, kind: input, shape index: {}]   ;;  %s1978_s3 = inlined_call_operand.hbm [shape: bf16[2,4,2,4,2,4,8], index: 3, kind: output, shape index: {}]  }
   0x1   :  { %10 = vsyncpa [#allocation3 + $0x1], 0 }
   0x2   :  { %11 = vsyncpa [#allocation6], 0 }
   0x3   :  { %12 = vsyncpa [#allocation4], 0 }
   0x4   :  { %14 = vsyncpa [#allocation4 + $0x1], 0  ;;  %s1539_s12 = smov 0   ;;  %s1541_s13 = smov 0  }
   0x5   :  { %s1543_s14 = smov 0   ;;  %s1545_s15 = smov 0  }
   0x6 LB: > { %s1560_s16 = sadd.s32 4294967295, %s1509_s15   ;;  %s1159_s17 = sadd.s32 4294967294, %s1509_s15   ;;  %s1509_s15 = sphi %s1545_s15, %s2000_s15   ;;  %s1505_s14 = sphi %s1543_s14, %s1999_s14   ;;  %s1501_s13 = sphi %s1541_s13, %s1998_s13   ;;  %s1497_s12 = sphi %s1539_s12, %s1997_s12  }
   0x7   : > { %p40_p0 = scmp.ne.s32.totalorder %s1501_s13, %s1497_s12  ;;  %p1979_p1 = scmp.eq.s32.totalorder %s1560_s16, 0 }
   0x8   : > { %p112_p3 = scmp.eq.s32.totalorder %s1159_s17, 1  ;;  %p1160_p5 = scmp.ge.s32.totalorder %s1509_s15, 1 }
   0x9   : > { %p1569_p4 = por %p1979_p1, %p40_p0  ;;  %p119_p7 = scmp.lt.s32.totalorder %s1509_s15, 3 }
   0xa   : > { %p1574_p6 = por %p112_p3, %p40_p0  ;;  %s1511_s21 = smov [#allocation5]  }
   0xb   : > { %s1983_s18 = scalar_select %p1569_p4, 1, 0 }
   0xc   : > { %s1984_s19 = scalar_select %p1574_p6, 1, 0 }
   0xd   : > { %p1579_p8 = pnand %p1160_p5, %p119_p7  ;;  %s131_s22 = sshll.u32 %s1511_s21, 4  ;;  %s132_s22 = int_to_ptr.vmem [resolvable:$true] %s131_s22 }
   0xe   : > { %s1593_s24 = sadd.s32 1, %s1509_s15   ;;  %s27_s25 = sadd.s32 1, %s1505_s14 }
   0xf   : > { %s1985_s20 = scalar_select %p1579_p8, 1, 0 }
  0x10   : > { %p1333_p9 = pneg %p1579_p8  ;;  %s24_s26 = ssub.s32 %s1509_s15, %s1593_s24 }
  0x11   : > { %s1398_s27 = scalar_lea.vmem %s132_s22, 128  ;;  %p1406_p5 = scmp.lt.s32.totalorder %s132_s22, %s132_s22 }
  0x12   : > { %p1588_p11 = pnand %p1333_p9, %p1979_p1  ;;  %p1399_p13 = scmp.ne.s32.totalorder %s132_s22, %s1398_s27 }
  0x13   : > { %p1407_p7 = scmp.lt.s32.totalorder %s1398_s27, %s1398_s27 }
  0x14   : > { %p1389_p12 = pneg %p1588_p11 }
  0x15   : > { %p1408_p10 = por %p1407_p7, %p1406_p5 }
  0x16   : > { %p1401_p0 = pnand %p1399_p13, %p1389_p12 }
  0x18   : > { %p1402_p3 = pneg %p1401_p0 }
  0x1a   : > { %p1409_p2 = pnand %p1408_p10, %p1402_p3 }
  0x1c   : > { %1412 = shalt.err (!%p1409_p2)
}
  0x1d   : > { %s1512_s28 = smov 32   ;;  %s1513_s29 = smov 2  }
  0x1e   : > { %1336 = dma.hbm_to_vmem [thread:$0]  (!%p1588_p11), %s1976_s1, 128, %s132_s22, [#allocation6], %s1512_s28, %s1512_s28, %s1513_s29  }
  0x1f   : > { %p25_p2 = scmp.eq.s32.totalorder %s24_s26, 0  ;;  %p34_p9 = scmp.ne.s32.totalorder %s1505_s14, %s1501_s13 }
  0x20   : > { %p35_p10 = scmp.eq.s32.totalorder %s1509_s15, 0  ;;  %p1346_p12 = scmp.lt.s32.totalorder %s1509_s15, 2 }
  0x21   : > { %s1613_s5 = scalar_select %p25_p2, %s1505_s14, %s27_s25  }
  0x22   : > { %p36_p13 = por %p35_p10, %p34_p9  ;;  %p1987_p0 = scmp.eq.s32.totalorder %s1560_s16, 1 }
  0x23   : > { %s148_s7 = sand.u32 1, %s1505_s14   ;;  %s1259_s8 = sshll.u32 %s1509_s15, 9 }
  0x24   : > { %p1617_p3 = por %p1987_p0, %p34_p9  ;;  %s1163_s9 = sshll.u32 %s148_s7, 5 }
  0x25   : > { %s1626_s17 = scalar_lea.hbm %s1975_s0, %s1259_s8  ;;  %s152_s21 = scalar_lea.vmem [#allocation2], %s1163_s9 }
  0x26   : > { %s1988_s6 = scalar_select %p1617_p3, 1, 0 }
  0x27   : > { %s159_s22 = sshll.u32 %s152_s21, 4  ;;  %p1628_p11 = pnand %p1346_p12, %p36_p13  ;;  %s1632_s22 = int_to_ptr.vmem [resolvable:$true] %s159_s22 }
  0x28   : > { %s1634_s25 = scalar_lea.sflag [#allocation3], %s148_s7  ;;  %s1413_s26 = scalar_lea.hbm %s1626_s17, 512 }
  0x29   : > { %p1414_p5 = scmp.ne.s32.totalorder %s1626_s17, %s1413_s26  ;;  %p1415_p7 = pneg %p1628_p11 }
  0x2a   : > { %s1418_s4 = scalar_lea.hbm %s1975_s0, 1024  ;;  %p1419_p10 = scmp.lt.s32.totalorder %s1626_s17, %s1975_s0 }
  0x2b   : > { %p1416_p2 = pnand %p1415_p7, %p1414_p5  ;;  %p1420_p12 = scmp.lt.s32.totalorder %s1418_s4, %s1413_s26 }
  0x2d   : > { %p1417_p9 = pneg %p1416_p2  ;;  %p1421_p13 = por %p1420_p12, %p1419_p10 }
  0x2f   : > { %p1422_p0 = pnand %p1421_p13, %p1417_p9 }
  0x31   : > { %1425 = shalt.err (!%p1422_p0)
}
  0x32   : > { %s1426_s7 = scalar_lea.vmem %s1632_s22, 512  ;;  %s1514_s10 = smov [#allocation2]  }
  0x33   : > { %p1427_p1 = scmp.ne.s32.totalorder %s1632_s22, %s1426_s7  ;;  %s1431_s11 = sshll.u32 %s1514_s10, 4  ;;  %s1432_s11 = int_to_ptr.vmem [resolvable:$false] %s1431_s11 }
  0x34   : > { %s1433_s21 = scalar_lea.vmem %s1432_s11, 1024  ;;  %p1434_p2 = scmp.lt.s32.totalorder %s1632_s22, %s1432_s11 }
  0x35   : > { %p1429_p6 = pnand %p1427_p1, %p1415_p7  ;;  %p1435_p3 = scmp.lt.s32.totalorder %s1433_s21, %s1426_s7 }
  0x37   : > { %p1430_p5 = pneg %p1429_p6  ;;  %p1436_p4 = por %p1435_p3, %p1434_p2 }
  0x39   : > { %p1437_p8 = pnand %p1436_p4, %p1430_p5 }
  0x3b   : > { %1440 = shalt.err (!%p1437_p8)
}
  0x3c   : > { %1340 = dma.hbm_to_vmem [thread:$0]  (!%p1628_p11), %s1626_s17, 512, %s1632_s22, %s1634_s25, %s1512_s28, %s1512_s28, %s1513_s29  }
  0x3d   : > { %p1990_p1 = scmp.ne.s32.totalorder %s1985_s20, 0 }
  0x3e   : > { %s1661_s26 = sand.u32 (!%p1990_p1), 1, %s1501_s13   ;;  %p1991_p4 = scmp.ne.s32.totalorder (!%p1990_p1), %s1983_s18, 0 }
  0x3f   : > { %171 = sbr.rel (%p1990_p1) target bundleno = 339 (0x153), region = 32  ;;  %s1167_s27 = sshll.u32 (!%p1990_p1), %s1661_s26, 5 }
  0x40   : > { %s174_s30 = scalar_lea.sflag (!%p1990_p1), [#allocation3], %s1661_s26  ;;  %s1665_s4 = scalar_lea.vmem (!%p1990_p1), [#allocation2], %s1167_s27 }
  0x44   : > { %1484 = dma.done.wait (%p1991_p4), %s174_s30, 512  }
  0x45   : > { %1486 = vsyncadd (%p1991_p4), %s174_s30, 4294966784  ;;  %p1992_p6 = scmp.eq.s32.totalorder %s1560_s16, 0 }
  0x47   : > { %1488 = dma.done.wait (%p1992_p6), [#allocation6], 128   ;;  %p1993_p8 = pmov %p1992_p6 }
  0x48   : > { %v250_v0 = vlaneseq  ;;  %v1515_v1 = vmov 1983009808   ;;  %vm326_vm0 = vcmask 1041408   ;;  %v221_v5 = vld [vmem:[#allocation5] sm:$0x3]  ;;  %vm313_vm1 = vcmask 31744  }
  0x49   : > { %1490 = vsyncadd (%p1993_p8), [#allocation6], 4294967168  ;;  %v248_v2 = vunpack.c.l.s4 %v1515_v1  ;;  %v505_v6 = vld [vmem:[#allocation5 + $0x2] sm:$0x3]  ;;  %v205_v7 = vld [vmem:[%s1665_s4] sm:$0x3]  ;;  %1321 = vmatprep.subr.msk.bf16.mxu0 %vm326_vm0, %v221_v5 }
  0x4a   : > { %v251_v4 = vshrl.u32 %v250_v0, 7  ;;  %1322 = vmatprep.subr.msk.bf16.mxu1 %vm326_vm0, %v505_v6  ;;  %v328_v9 = vsel %vm326_vm0, %v221_v5, 0  ;;  %v514_v10 = vsel %vm326_vm0, %v505_v6, 0  ;;  %v206_v11 = vld [vmem:[%s1665_s4 + $0x2] sm:$0x3]  ;;  %s1169_s28 = sshll.u32 %s1661_s26, 7 }
  0x4b   : > { %v249_v3 = vunpack.c.0.s8 %v248_v2  ;;  %v207_v12 = vld [vmem:[%s1665_s4 + $0x4] sm:$0x3]  ;;  %1282 = vmatpush3.bf16.msra.mxu0 %v328_v9  ;;  %1292 = vmatpush3.bf16.msra.mxu1 %v514_v10  ;;  %v208_v13 = vld [vmem:[%s1665_s4 + $0x6] sm:$0x3]  ;;  %v245_v14 = vcombine.low %v205_v7, %v206_v11  ;;  %v209_v18 = vld [vmem:[%s1665_s4 + $0x8] sm:$0x3] }
  0x4c   : > { %v691_v15 = vld [vmem:[#allocation5 + $0x4] sm:$0x3]  ;;  %v877_v16 = vld [vmem:[#allocation5 + $0x6] sm:$0x3]  ;;  %v246_v17 = vcombine.low %v207_v12, %v208_v13  ;;  %v210_v19 = vld [vmem:[%s1665_s4 + $0xa] sm:$0x3] }
  0x4d   : > { %v1676_v8 = vsub.s32 %v249_v3, %v251_v4  ;;  %1323 = vmatprep.subr.msk.bf16.mxu0 %vm326_vm0, %v691_v15  ;;  %1324 = vmatprep.subr.msk.bf16.mxu1 %vm326_vm0, %v877_v16  ;;  %v211_v20 = vld [vmem:[%s1665_s4 + $0xc] sm:$0x3]  ;;  %v212_v22 = vld [vmem:[%s1665_s4 + $0xe] sm:$0x3]  ;;  %v262_v23 = vcombine.low %v209_v18, %v210_v19  ;;  %v213_v24 = vld [vmem:[%s1665_s4 + $0x10] sm:$0x3] }
  0x4e   : > { %v263_v26 = vcombine.low %v211_v20, %v212_v22  ;;  %v214_v27 = vld [vmem:[%s1665_s4 + $0x12] sm:$0x3]  ;;  %v215_v28 = vld [vmem:[%s1665_s4 + $0x14] sm:$0x3]  ;;  %v216_v29 = vld [vmem:[%s1665_s4 + $0x16] sm:$0x3] }
  0x4f   : > { %v253_v21 = vrot.slane %v245_v14, %v1676_v8  ;;  %v260_v25 = vrot.slane %v246_v17, %v1676_v8  ;;  %v270_v30 = vrot.slane %v262_v23, %v1676_v8  ;;  %v279_v31 = vcombine.low %v213_v24, %v214_v27  ;;  %v217_v33 = vld [vmem:[%s1665_s4 + $0x18] sm:$0x3]  ;;  %v218_v34 = vld [vmem:[%s1665_s4 + $0x1a] sm:$0x3]  ;;  %v219_v35 = vld [vmem:[%s1665_s4 + $0x1c] sm:$0x3] }
  0x50   : > { %v280_v32 = vcombine.low %v215_v28, %v216_v29  ;;  %v277_v37 = vrot.slane %v263_v26, %v1676_v8  ;;  %v220_v38 = vld [vmem:[%s1665_s4 + $0x1e] sm:$0x3]  ;;  %v296_v39 = vcombine.low %v217_v33, %v218_v34  ;;  %v700_v44 = vsel %vm326_vm0, %v691_v15, 0  ;;  %v1728_v52 = vld [vmem:[%s1977_s2] ss:$0 sm:$0xff]  ;;  %s1743_s29 = scalar_lea.vmem [#allocation7], %s1169_s28 }
  0x51   : > { %v261_v36 = vcombine.low %v253_v21, %v260_v25  ;;  %v287_v40 = vrot.slane %v279_v31, %v1676_v8  ;;  %v297_v42 = vcombine.low %v219_v35, %v220_v38  ;;  %v886_v45 = vsel %vm326_vm0, %v877_v16, 0  ;;  %s1260_s17 = sshll.u32 %s1560_s16, 11  ;;  %s1076_s22 = sshll.u32 %s1743_s29, 4  ;;  %s1908_s22 = int_to_ptr.vmem [resolvable:$true] %s1076_s22 }
  0x52   : > { %v294_v41 = vrot.slane %v280_v32, %v1676_v8  ;;  %v278_v43 = vcombine.low %v270_v30, %v277_v37  ;;  %v304_v47 = vrot.slane %v296_v39, %v1676_v8  ;;  %vm487_vm2 = vcmask 58368   ;;  %s1906_s25 = scalar_lea.hbm %s1978_s3, %s1260_s17  ;;  %s1063_s8 = scalar_lea.sflag [#allocation4], %s1661_s26 }
  0x53   : > { %1283 = vmatprep.mubr.msk.bf16.mxu0 %vm313_vm1, %v261_v36  ;;  %1293 = vmatprep.mubr.msk.bf16.mxu1 %vm313_vm1, %v261_v36  ;;  %v311_v48 = vrot.slane %v297_v42, %v1676_v8  ;;  %s1441_s9 = scalar_lea.vmem %s1908_s22, 2048  ;;  %p1994_p11 = scmp.ne.s32.totalorder %s1988_s6, 0 }
  0x54   : > { %v295_v46 = vcombine.low %v287_v40, %v294_v41  ;;  %1284 = vmatmul.mubr.msk.bf16.vlgmr.msra.gmra.mxu0 %vm313_vm1, %v278_v43  ;;  %1294 = vmatmul.mubr.msk.bf16.vlgmr.msra.gmra.mxu1 %vm313_vm1, %v278_v43  ;;  %p1442_p3 = scmp.ne.s32.totalorder %s1908_s22, %s1441_s9  ;;  %s1516_s7 = smov [#allocation7]  }
  0x55   : > { %1302 = vmatpush3.bf16.msra.mxu0 %v700_v44  ;;  %1312 = vmatpush3.bf16.msra.mxu1 %v886_v45  ;;  %v312_v49 = vcombine.low %v304_v47, %v311_v48  ;;  %s1445_s10 = sshll.u32 %s1516_s7, 4  ;;  %s1446_s10 = int_to_ptr.vmem [resolvable:$false] %s1445_s10 }
  0x56   : > { %1287 = vmatprep.mubr.msk.bf16.mxu0 %vm313_vm1, %v295_v46  ;;  %1297 = vmatprep.mubr.msk.bf16.mxu1 %vm313_vm1, %v295_v46  ;;  %p1443_p7 = pnand %p1442_p3, %p1994_p11  ;;  %s1447_s11 = scalar_lea.vmem %s1446_s10, 4096 }
  0x57   : > { %p1448_p10 = scmp.lt.s32.totalorder %s1908_s22, %s1446_s10  ;;  %p1449_p12 = scmp.lt.s32.totalorder %s1447_s11, %s1441_s9 }
  0x58   : > { %p1444_p9 = pneg %p1443_p7 }
  0x59   : > { %p1450_p13 = por %p1449_p12, %p1448_p10 }
  0x5b   : > { %p1451_p0 = pnand %p1450_p13, %p1444_p9 }
  0x5c   : > { %1288 = vmatmul.mubr.msk.bf16.gmra.mxu0 %vm313_vm1, %v312_v49  ;;  %1298 = vmatmul.mubr.msk.bf16.gmra.mxu1 %vm313_vm1, %v312_v49 }
  0x5d   : > { %1303 = vmatprep.mubr.msk.bf16.mxu0 %vm313_vm1, %v261_v36  ;;  %1313 = vmatprep.mubr.msk.bf16.mxu1 %vm313_vm1, %v261_v36 }
  0x64   : > { %1304 = vmatmul.mubr.msk.bf16.vlgmr.msra.gmra.mxu0 %vm313_vm1, %v278_v43  ;;  %1314 = vmatmul.mubr.msk.bf16.vlgmr.msra.gmra.mxu1 %vm313_vm1, %v278_v43 }
  0x65   : > { %1307 = vmatprep.mubr.msk.bf16.mxu0 %vm313_vm1, %v295_v46  ;;  %1317 = vmatprep.mubr.msk.bf16.mxu1 %vm313_vm1, %v295_v46 }
  0x6c   : > { %1308 = vmatmul.mubr.msk.bf16.gmra.mxu0 %vm313_vm1, %v312_v49  ;;  %1318 = vmatmul.mubr.msk.bf16.gmra.mxu1 %vm313_vm1, %v312_v49 }
 0x114   : > { %v1285_v50 = vpop.f32.mrf.mxu0  ;;  %v1295_v51 = vpop.f32.mrf.mxu1 }
 0x115   : > { %v373_v57 = vadd.f32 %v1285_v50, %v1728_v52  ;;  %v559_v58 = vadd.f32 %v1295_v51, %v1728_v52 }
 0x116   : > { %v364_v53 = vpop.f32.mrf.mxu0  ;;  %v550_v54 = vpop.f32.mrf.mxu1 }
 0x117   : > { %v365_v3 = vadd.f32 %v1728_v52, %v364_v53  ;;  %v551_v4 = vadd.f32 %v1728_v52, %v550_v54 }
 0x118   : > { %v1286_v55 = vpop.f32.mrf.mxu0  ;;  %v1296_v56 = vpop.f32.mrf.mxu1 }
 0x119   : > { %v376_v59 = vadd.f32 %v1286_v55, %v1728_v52  ;;  %v562_v60 = vadd.f32 %v1296_v56, %v1728_v52 }
 0x11a   : > { %v367_v61 = vpop.f32.mrf.mxu0  ;;  %v553_v62 = vpop.f32.mrf.mxu1 }
 0x11b   : > { %v396_v63 = vpack.c.bf16 %v376_v59, %v373_v57  ;;  %v1176_v0 = vpack.c.bf16 %v376_v59, %v376_v59  ;;  %v582_v1 = vpack.c.bf16 %v562_v60, %v559_v58  ;;  %v1185_v2 = vpack.c.bf16 %v562_v60, %v562_v60 }
 0x11c   : > { %v368_v5 = vadd.f32 %v1728_v52, %v367_v61  ;;  %v554_v6 = vadd.f32 %v1728_v52, %v553_v62  ;;  %v1289_v7 = vpop.f32.mrf.mxu0  ;;  %v1299_v9 = vpop.f32.mrf.mxu1 }
 0x11d   : > { %v427_v10 = vrot.slane %v396_v63, %v1676_v8  ;;  %v434_v11 = vrot.slane %v1176_v0, %v1676_v8  ;;  %v613_v12 = vrot.slane %v582_v1, %v1676_v8  ;;  %v620_v13 = vrot.slane %v1185_v2, %v1676_v8 }
 0x11e   : > { %v395_v14 = vpack.c.bf16 %v368_v5, %v365_v3  ;;  %v1175_v15 = vpack.c.bf16 %v368_v5, %v368_v5  ;;  %v581_v16 = vpack.c.bf16 %v554_v6, %v551_v4  ;;  %v1184_v17 = vpack.c.bf16 %v554_v6, %v554_v6  ;;  %v380_v18 = vpop.f32.mrf.mxu0  ;;  %v566_v19 = vpop.f32.mrf.mxu1 }
 0x11f   : > { %v435_v20 = vcombine.high %v427_v10, %v427_v10  ;;  %v436_v21 = vcombine.high %v434_v11, %v434_v11  ;;  %492 = vst.msk [vmem:[%s1743_s29 + $0x20] sm:$0x3] %vm487_vm2, %v427_v10  ;;  %494 = vst.msk [vmem:[%s1743_s29 + $0x28] sm:$0x3] %vm487_vm2, %v434_v11  ;;  %v621_v22 = vcombine.high %v613_v12, %v613_v12 }
 0x120   : > { %v622_v23 = vcombine.high %v620_v13, %v620_v13  ;;  %1192 = vst.msk [vmem:[%s1743_s29 + $0x22] sm:$0x3] %vm487_vm2, %v613_v12  ;;  %1194 = vst.msk [vmem:[%s1743_s29 + $0x2a] sm:$0x3] %vm487_vm2, %v620_v13  ;;  %v410_v24 = vrot.slane %v395_v14, %v1676_v8  ;;  %v417_v25 = vrot.slane %v1175_v15, %v1676_v8  ;;  %v1290_v28 = vpop.f32.mrf.mxu0  ;;  %v1300_v29 = vpop.f32.mrf.mxu1 }
 0x121   : > { %v596_v26 = vrot.slane %v581_v16, %v1676_v8  ;;  %v603_v27 = vrot.slane %v1184_v17, %v1676_v8  ;;  %493 = vst.msk [vmem:[%s1743_s29 + $0x24] sm:$0x3] %vm487_vm2, %v435_v20  ;;  %495 = vst.msk [vmem:[%s1743_s29 + $0x2c] sm:$0x3] %vm487_vm2, %v436_v21  ;;  %v389_v30 = vadd.f32 %v1289_v7, %v1728_v52 }
 0x122   : > { %1193 = vst.msk [vmem:[%s1743_s29 + $0x26] sm:$0x3] %vm487_vm2, %v621_v22  ;;  %1195 = vst.msk [vmem:[%s1743_s29 + $0x2e] sm:$0x3] %vm487_vm2, %v622_v23  ;;  %v575_v31 = vadd.f32 %v1299_v9, %v1728_v52  ;;  %v418_v32 = vcombine.high %v410_v24, %v410_v24  ;;  %v419_v33 = vcombine.high %v417_v25, %v417_v25  ;;  %v383_v36 = vpop.f32.mrf.mxu0  ;;  %v569_v37 = vpop.f32.mrf.mxu1 }
 0x123   : > { %488 = vst.msk [vmem:[%s1743_s29] sm:$0x3] %vm487_vm2, %v410_v24  ;;  %490 = vst.msk [vmem:[%s1743_s29 + $0x8] sm:$0x3] %vm487_vm2, %v417_v25  ;;  %v604_v34 = vcombine.high %v596_v26, %v596_v26  ;;  %v605_v35 = vcombine.high %v603_v27, %v603_v27  ;;  %v392_v38 = vadd.f32 %v1290_v28, %v1728_v52 }
 0x124   : > { %1188 = vst.msk [vmem:[%s1743_s29 + $0x2] sm:$0x3] %vm487_vm2, %v596_v26  ;;  %1190 = vst.msk [vmem:[%s1743_s29 + $0xa] sm:$0x3] %vm487_vm2, %v603_v27  ;;  %v578_v39 = vadd.f32 %v1300_v29, %v1728_v52  ;;  %v384_v40 = vadd.f32 %v1728_v52, %v383_v36  ;;  %v570_v41 = vadd.f32 %v1728_v52, %v569_v37  ;;  %v1305_v44 = vpop.f32.mrf.mxu0  ;;  %v1315_v45 = vpop.f32.mrf.mxu1 }
 0x125   : > { %489 = vst.msk [vmem:[%s1743_s29 + $0x4] sm:$0x3] %vm487_vm2, %v418_v32  ;;  %491 = vst.msk [vmem:[%s1743_s29 + $0xc] sm:$0x3] %vm487_vm2, %v419_v33  ;;  %v381_v42 = vadd.f32 %v1728_v52, %v380_v18  ;;  %v567_v43 = vadd.f32 %v1728_v52, %v566_v19  ;;  %v398_v46 = vpack.c.bf16 %v392_v38, %v389_v30 }
 0x126   : > { %1189 = vst.msk [vmem:[%s1743_s29 + $0x6] sm:$0x3] %vm487_vm2, %v604_v34  ;;  %1191 = vst.msk [vmem:[%s1743_s29 + $0xe] sm:$0x3] %vm487_vm2, %v605_v35  ;;  %v1178_v47 = vpack.c.bf16 %v392_v38, %v392_v38  ;;  %v584_v48 = vpack.c.bf16 %v578_v39, %v575_v31  ;;  %v1187_v49 = vpack.c.bf16 %v578_v39, %v578_v39  ;;  %v736_v55 = vpop.f32.mrf.mxu0  ;;  %v922_v56 = vpop.f32.mrf.mxu1 }
 0x127   : > { %v397_v50 = vpack.c.bf16 %v384_v40, %v381_v42  ;;  %v1177_v51 = vpack.c.bf16 %v384_v40, %v384_v40  ;;  %v583_v53 = vpack.c.bf16 %v570_v41, %v567_v43  ;;  %v1186_v54 = vpack.c.bf16 %v570_v41, %v570_v41 }
 0x128   : > { %v461_v57 = vrot.slane %v398_v46, %v1676_v8  ;;  %v468_v58 = vrot.slane %v1178_v47, %v1676_v8  ;;  %v647_v59 = vrot.slane %v584_v48, %v1676_v8  ;;  %v654_v60 = vrot.slane %v1187_v49, %v1676_v8  ;;  %v1306_v1 = vpop.f32.mrf.mxu0  ;;  %v1316_v2 = vpop.f32.mrf.mxu1 }
 0x129   : > { %v444_v61 = vrot.slane %v397_v50, %v1676_v8  ;;  %v451_v62 = vrot.slane %v1177_v51, %v1676_v8  ;;  %v630_v63 = vrot.slane %v583_v53, %v1676_v8  ;;  %v637_v0 = vrot.slane %v1186_v54, %v1676_v8 }
 0x12a   : > { %v469_v3 = vcombine.high %v461_v57, %v461_v57  ;;  %v470_v4 = vcombine.high %v468_v58, %v468_v58  ;;  %500 = vst.msk [vmem:[%s1743_s29 + $0x60] sm:$0x3] %vm487_vm2, %v461_v57  ;;  %502 = vst.msk [vmem:[%s1743_s29 + $0x68] sm:$0x3] %vm487_vm2, %v468_v58  ;;  %v655_v5 = vcombine.high %v647_v59, %v647_v59  ;;  %v739_v12 = vpop.f32.mrf.mxu0  ;;  %v925_v13 = vpop.f32.mrf.mxu1 }
 0x12b   : > { %v656_v6 = vcombine.high %v654_v60, %v654_v60  ;;  %1200 = vst.msk [vmem:[%s1743_s29 + $0x62] sm:$0x3] %vm487_vm2, %v647_v59  ;;  %1202 = vst.msk [vmem:[%s1743_s29 + $0x6a] sm:$0x3] %vm487_vm2, %v654_v60  ;;  %v452_v7 = vcombine.high %v444_v61, %v444_v61  ;;  %v453_v9 = vcombine.high %v451_v62, %v451_v62 }
 0x12c   : > { %496 = vst.msk [vmem:[%s1743_s29 + $0x40] sm:$0x3] %vm487_vm2, %v444_v61  ;;  %498 = vst.msk [vmem:[%s1743_s29 + $0x48] sm:$0x3] %vm487_vm2, %v451_v62  ;;  %v638_v10 = vcombine.high %v630_v63, %v630_v63  ;;  %v639_v11 = vcombine.high %v637_v0, %v637_v0  ;;  %v745_v14 = vadd.f32 %v1305_v44, %v1728_v52  ;;  %v1309_v20 = vpop.f32.mrf.mxu0  ;;  %v1319_v21 = vpop.f32.mrf.mxu1 }
 0x12d   : > { %1196 = vst.msk [vmem:[%s1743_s29 + $0x42] sm:$0x3] %vm487_vm2, %v630_v63  ;;  %1198 = vst.msk [vmem:[%s1743_s29 + $0x4a] sm:$0x3] %vm487_vm2, %v637_v0  ;;  %v931_v15 = vadd.f32 %v1315_v45, %v1728_v52  ;;  %v748_v16 = vadd.f32 %v1306_v1, %v1728_v52  ;;  %v934_v17 = vadd.f32 %v1316_v2, %v1728_v52 }
 0x12e   : > { %501 = vst.msk [vmem:[%s1743_s29 + $0x64] sm:$0x3] %vm487_vm2, %v469_v3  ;;  %503 = vst.msk [vmem:[%s1743_s29 + $0x6c] sm:$0x3] %vm487_vm2, %v470_v4  ;;  %v740_v18 = vadd.f32 %v1728_v52, %v739_v12  ;;  %v926_v19 = vadd.f32 %v1728_v52, %v925_v13  ;;  %v737_v22 = vadd.f32 %v1728_v52, %v736_v55  ;;  %v752_v28 = vpop.f32.mrf.mxu0  ;;  %v938_v29 = vpop.f32.mrf.mxu1 }
 0x12f   : > { %1201 = vst.msk [vmem:[%s1743_s29 + $0x66] sm:$0x3] %vm487_vm2, %v655_v5  ;;  %1203 = vst.msk [vmem:[%s1743_s29 + $0x6e] sm:$0x3] %vm487_vm2, %v656_v6  ;;  %v923_v23 = vadd.f32 %v1728_v52, %v922_v56  ;;  %v768_v24 = vpack.c.bf16 %v748_v16, %v745_v14  ;;  %v1210_v25 = vpack.c.bf16 %v748_v16, %v748_v16 }
 0x130   : > { %497 = vst.msk [vmem:[%s1743_s29 + $0x44] sm:$0x3] %vm487_vm2, %v452_v7  ;;  %499 = vst.msk [vmem:[%s1743_s29 + $0x4c] sm:$0x3] %vm487_vm2, %v453_v9  ;;  %v954_v26 = vpack.c.bf16 %v934_v17, %v931_v15  ;;  %v1235_v27 = vpack.c.bf16 %v934_v17, %v934_v17  ;;  %v767_v30 = vpack.c.bf16 %v740_v18, %v737_v22  ;;  %v1310_v38 = vpop.f32.mrf.mxu0  ;;  %v1320_v39 = vpop.f32.mrf.mxu1 }
 0x131   : > { %1197 = vst.msk [vmem:[%s1743_s29 + $0x46] sm:$0x3] %vm487_vm2, %v638_v10  ;;  %1199 = vst.msk [vmem:[%s1743_s29 + $0x4e] sm:$0x3] %vm487_vm2, %v639_v11  ;;  %v1209_v31 = vpack.c.bf16 %v740_v18, %v740_v18  ;;  %v953_v32 = vpack.c.bf16 %v926_v19, %v923_v23  ;;  %v1234_v33 = vpack.c.bf16 %v926_v19, %v926_v19 }
 0x132   : > { %v799_v34 = vrot.slane %v768_v24, %v1676_v8  ;;  %v806_v35 = vrot.slane %v1210_v25, %v1676_v8  ;;  %v985_v36 = vrot.slane %v954_v26, %v1676_v8  ;;  %v992_v37 = vrot.slane %v1235_v27, %v1676_v8  ;;  %v755_v48 = vpop.f32.mrf.mxu0  ;;  %v941_v49 = vpop.f32.mrf.mxu1 }
 0x133   : > { %v782_v40 = vrot.slane %v767_v30, %v1676_v8  ;;  %v789_v41 = vrot.slane %v1209_v31, %v1676_v8  ;;  %v968_v42 = vrot.slane %v953_v32, %v1676_v8  ;;  %v975_v43 = vrot.slane %v1234_v33, %v1676_v8 }
 0x134   : > { %v807_v44 = vcombine.high %v799_v34, %v799_v34  ;;  %v808_v45 = vcombine.high %v806_v35, %v806_v35  ;;  %1217 = vst.msk [vmem:[%s1743_s29 + $0x30] sm:$0x3] %vm487_vm2, %v799_v34  ;;  %1219 = vst.msk [vmem:[%s1743_s29 + $0x38] sm:$0x3] %vm487_vm2, %v806_v35  ;;  %v993_v46 = vcombine.high %v985_v36, %v985_v36 }
 0x135   : > { %v994_v47 = vcombine.high %v992_v37, %v992_v37  ;;  %1242 = vst.msk [vmem:[%s1743_s29 + $0x32] sm:$0x3] %vm487_vm2, %v985_v36  ;;  %1244 = vst.msk [vmem:[%s1743_s29 + $0x3a] sm:$0x3] %vm487_vm2, %v992_v37  ;;  %v790_v50 = vcombine.high %v782_v40, %v782_v40  ;;  %v791_v51 = vcombine.high %v789_v41, %v789_v41 }
 0x136   : > { %1213 = vst.msk [vmem:[%s1743_s29 + $0x10] sm:$0x3] %vm487_vm2, %v782_v40  ;;  %1215 = vst.msk [vmem:[%s1743_s29 + $0x18] sm:$0x3] %vm487_vm2, %v789_v41  ;;  %v976_v53 = vcombine.high %v968_v42, %v968_v42  ;;  %v977_v54 = vcombine.high %v975_v43, %v975_v43  ;;  %v761_v55 = vadd.f32 %v1309_v20, %v1728_v52 }
 0x137   : > { %1238 = vst.msk [vmem:[%s1743_s29 + $0x12] sm:$0x3] %vm487_vm2, %v968_v42  ;;  %1240 = vst.msk [vmem:[%s1743_s29 + $0x1a] sm:$0x3] %vm487_vm2, %v975_v43  ;;  %v947_v56 = vadd.f32 %v1319_v21, %v1728_v52  ;;  %v764_v57 = vadd.f32 %v1310_v38, %v1728_v52  ;;  %v950_v58 = vadd.f32 %v1320_v39, %v1728_v52 }
 0x138   : > { %1218 = vst.msk [vmem:[%s1743_s29 + $0x34] sm:$0x3] %vm487_vm2, %v807_v44  ;;  %1220 = vst.msk [vmem:[%s1743_s29 + $0x3c] sm:$0x3] %vm487_vm2, %v808_v45  ;;  %v753_v59 = vadd.f32 %v1728_v52, %v752_v28  ;;  %v939_v60 = vadd.f32 %v1728_v52, %v938_v29  ;;  %v756_v61 = vadd.f32 %v1728_v52, %v755_v48 }
 0x139   : > { %1243 = vst.msk [vmem:[%s1743_s29 + $0x36] sm:$0x3] %vm487_vm2, %v993_v46  ;;  %1245 = vst.msk [vmem:[%s1743_s29 + $0x3e] sm:$0x3] %vm487_vm2, %v994_v47  ;;  %v942_v62 = vadd.f32 %v1728_v52, %v941_v49  ;;  %v770_v63 = vpack.c.bf16 %v764_v57, %v761_v55  ;;  %v1212_v0 = vpack.c.bf16 %v764_v57, %v764_v57 }
 0x13a   : > { %1214 = vst.msk [vmem:[%s1743_s29 + $0x14] sm:$0x3] %vm487_vm2, %v790_v50  ;;  %1216 = vst.msk [vmem:[%s1743_s29 + $0x1c] sm:$0x3] %vm487_vm2, %v791_v51  ;;  %v956_v1 = vpack.c.bf16 %v950_v58, %v947_v56  ;;  %v1237_v2 = vpack.c.bf16 %v950_v58, %v950_v58  ;;  %v769_v3 = vpack.c.bf16 %v756_v61, %v753_v59 }
 0x13b   : > { %1239 = vst.msk [vmem:[%s1743_s29 + $0x16] sm:$0x3] %vm487_vm2, %v976_v53  ;;  %1241 = vst.msk [vmem:[%s1743_s29 + $0x1e] sm:$0x3] %vm487_vm2, %v977_v54  ;;  %v1211_v4 = vpack.c.bf16 %v756_v61, %v756_v61  ;;  %v955_v5 = vpack.c.bf16 %v942_v62, %v939_v60  ;;  %v1236_v6 = vpack.c.bf16 %v942_v62, %v942_v62 }
 0x13c   : > { %v833_v7 = vrot.slane %v770_v63, %v1676_v8  ;;  %v840_v9 = vrot.slane %v1212_v0, %v1676_v8  ;;  %v1019_v52 = vrot.slane %v956_v1, %v1676_v8  ;;  %v1026_v10 = vrot.slane %v1237_v2, %v1676_v8 }
 0x13d   : > { %v816_v11 = vrot.slane %v769_v3, %v1676_v8  ;;  %v823_v12 = vrot.slane %v1211_v4, %v1676_v8  ;;  %v1002_v13 = vrot.slane %v955_v5, %v1676_v8  ;;  %v1009_v14 = vrot.slane %v1236_v6, %v1676_v8 }
 0x13e   : > { %v841_v15 = vcombine.high %v833_v7, %v833_v7  ;;  %v842_v16 = vcombine.high %v840_v9, %v840_v9  ;;  %1225 = vst.msk [vmem:[%s1743_s29 + $0x70] sm:$0x3] %vm487_vm2, %v833_v7  ;;  %1227 = vst.msk [vmem:[%s1743_s29 + $0x78] sm:$0x3] %vm487_vm2, %v840_v9  ;;  %v1027_v17 = vcombine.high %v1019_v52, %v1019_v52 }
 0x13f   : > { %v1028_v18 = vcombine.high %v1026_v10, %v1026_v10  ;;  %1250 = vst.msk [vmem:[%s1743_s29 + $0x72] sm:$0x3] %vm487_vm2, %v1019_v52  ;;  %1252 = vst.msk [vmem:[%s1743_s29 + $0x7a] sm:$0x3] %vm487_vm2, %v1026_v10  ;;  %v824_v8 = vcombine.high %v816_v11, %v816_v11  ;;  %v825_v19 = vcombine.high %v823_v12, %v823_v12 }
 0x140   : > { %1221 = vst.msk [vmem:[%s1743_s29 + $0x50] sm:$0x3] %vm487_vm2, %v816_v11  ;;  %1223 = vst.msk [vmem:[%s1743_s29 + $0x58] sm:$0x3] %vm487_vm2, %v823_v12  ;;  %v1010_v20 = vcombine.high %v1002_v13, %v1002_v13  ;;  %v1011_v21 = vcombine.high %v1009_v14, %v1009_v14 }
 0x141   : > { %1246 = vst.msk [vmem:[%s1743_s29 + $0x52] sm:$0x3] %vm487_vm2, %v1002_v13  ;;  %1248 = vst.msk [vmem:[%s1743_s29 + $0x5a] sm:$0x3] %vm487_vm2, %v1009_v14 }
 0x142   : > { %1226 = vst.msk [vmem:[%s1743_s29 + $0x74] sm:$0x3] %vm487_vm2, %v841_v15  ;;  %1228 = vst.msk [vmem:[%s1743_s29 + $0x7c] sm:$0x3] %vm487_vm2, %v842_v16 }
 0x143   : > { %1251 = vst.msk [vmem:[%s1743_s29 + $0x76] sm:$0x3] %vm487_vm2, %v1027_v17  ;;  %1253 = vst.msk [vmem:[%s1743_s29 + $0x7e] sm:$0x3] %vm487_vm2, %v1028_v18 }
 0x144   : > { %1222 = vst.msk [vmem:[%s1743_s29 + $0x54] sm:$0x3] %vm487_vm2, %v824_v8  ;;  %1224 = vst.msk [vmem:[%s1743_s29 + $0x5c] sm:$0x3] %vm487_vm2, %v825_v19 }
 0x145   : > { %1247 = vst.msk [vmem:[%s1743_s29 + $0x56] sm:$0x3] %vm487_vm2, %v1010_v20  ;;  %1249 = vst.msk [vmem:[%s1743_s29 + $0x5e] sm:$0x3] %vm487_vm2, %v1011_v21 }
 0x146   : > { %1454 = shalt.err (!%p1451_p0)
}
 0x147   : > { %s1455_s21 = scalar_lea.hbm %s1906_s25, 2048  ;;  %s1459_s4 = scalar_lea.hbm %s1978_s3, 4096 }
 0x148   : > { %p1456_p5 = scmp.ne.s32.totalorder %s1906_s25, %s1455_s21  ;;  %p1460_p4 = scmp.lt.s32.totalorder %s1906_s25, %s1978_s3 }
 0x149   : > { %p1461_p6 = scmp.lt.s32.totalorder %s1459_s4, %s1455_s21 }
 0x14a   : > { %p1457_p2 = pnand %p1456_p5, %p1994_p11 }
 0x14b   : > { %p1462_p8 = por %p1461_p6, %p1460_p4 }
 0x14c   : > { %p1458_p1 = pneg %p1457_p2 }
 0x14e   : > { %p1463_p3 = pnand %p1462_p8, %p1458_p1 }
 0x150   : > { %1466 = shalt.err (!%p1463_p3)
}
 0x151   : > { %s1517_s28 = smov 32   ;;  %s1518_s29 = smov 2  }
 0x152   : > { %1331 = dma.vmem_to_hbm [thread:$0]  (%p1994_p11), %s1908_s22, 2048, %s1906_s25, %s1063_s8, %s1517_s28, %s1517_s28, %s1518_s29  }
 0x153 PF: > { %s1091_s17 = sand.u32 1, %s1497_s12   ;;  %p1995_p7 = scmp.ne.s32.totalorder %s1984_s19, 0 }
 0x154   : > { %p1996_p9 = scmp.ge.s32.totalorder %s1509_s15, 2  ;;  %s1092_s16 = scalar_lea.sflag [#allocation4], %s1091_s17 }
 0x156   : > { %p1342_p10 = pnand %p1996_p9, %p1995_p7 }
 0x158   : > { %p1343_p12 = pneg %p1342_p10 }
 0x15a   : > { %1492 = dma.done.wait (%p1343_p12), %s1092_s16, 2048  }
 0x15b   : > { %1494 = vsyncadd (%p1343_p12), %s1092_s16, 4294965248  ;;  %p17_p13 = scmp.ge.s32.totalorder %s1593_s24, 4   ;;  %s1997_s12 = smov %s1501_s13 }
 0x15c   : > { %s1998_s13 = smov %s1505_s14  ;;  %s1999_s14 = smov %s1613_s5 }
 0x15d   : > { %s2000_s15 = smov %s1593_s24  ;;  %19 = sbr.rel (!%p17_p13) target bundleno = 6 (0x6), region = 87 }
 0x162   :  { %1097 = vsyncpa [#allocation3], 1 }
 0x163   :  { %1099 = vsyncpa [#allocation3 + $0x1], 1 }
 0x164   :  { %1100 = vsyncpa [#allocation6], 1 }
 0x165   :  { %1101 = vsyncpa [#allocation4], 1 }
 0x166   :  { %1103 = vsyncpa [#allocation4 + $0x1], 1 }

</bundles_post_ra>
